<compile_context>
chip_gen: v5e
topology: v5e:2x2
jax: 0.10.0
libtpu: 0.0.40
codegen_flags: <defaults>
</compile_context>

<pallas_src>
import functools

import jax
import jax.numpy as jnp
from jax.experimental import pallas as pl
from jax.experimental.pallas import tpu as pltpu


# ----------------------------------------------------------------------------
# Kernels
# ----------------------------------------------------------------------------

def _pose2d_nhwv_kernel(o_ref, a_ref, gx_ref, gy_ref, px_ref, py_ref, cf_ref,
                        *, inv_c, nV):
    """Emits the PyTorch eval layout directly (lane-dense nW*nV minor dim).

    o_ref : (1, 3*nV, Th, nW)  conv output block (native dtype)
    a_ref : (nV, nW, nW*nV)    one-hot scatter matrix A[v, w, w*nV + v] = 1
    gx_ref: (1, nW*nV)         (w + 0.5)/nW in the interleaved layout
    gy_ref: (Th, 1)            (h + 0.5)/nH
    out   : (1, Th, nW*nV)     px / py / conf
    """
    th = o_ref.shape[2]
    m = gx_ref.shape[1]
    c_acc = jnp.zeros((th, m), jnp.float32)
    x_acc = jnp.zeros((th, m), jnp.float32)
    y_acc = jnp.zeros((th, m), jnp.float32)
    # One-hot scatter matmuls: exact value selection, runs on the otherwise
    # idle MXU, and produces a lane-dense (nW*nV) minor dim -> no masked
    # vst and no post-kernel transpose pass over HBM.
    for v in range(nV):
        a_v = a_ref[v]                                           # (nW, nW*nV)
        c_acc += jnp.dot(o_ref[0, v], a_v,
                         preferred_element_type=jnp.float32)
        x_acc += jnp.dot(o_ref[0, nV + v], a_v,
                         preferred_element_type=jnp.float32)
        y_acc += jnp.dot(o_ref[0, 2 * nV + v], a_v,
                         preferred_element_type=jnp.float32)
    gx = gx_ref[...]                                             # (1, M)
    gy = gy_ref[...]                                             # (Th, 1)
    cf_ref[0] = jax.nn.sigmoid(c_acc).astype(cf_ref.dtype)
    px_ref[0] = (x_acc * inv_c + gx).astype(px_ref.dtype)
    py_ref[0] = (y_acc * inv_c + gy).astype(py_ref.dtype)


def _pose2d_cf_kernel(o_ref, gxy_ref, px_ref, py_ref, cf_ref, *, inv_c):
    """Channel-first fast path: pure streaming, no layout work at all.

    o_ref  : (Bt, 3, nV, Thw)  conv output block (native dtype)
    gxy_ref: (2, Thw)          row 0 = (w+0.5)/nW, row 1 = (h+0.5)/nH
    out    : (Bt, nV, Thw)     px / py / conf
    """
    o = o_ref[...]
    gx = gxy_ref[0:1, :]                                         # (1, Thw)
    gy = gxy_ref[1:2, :]
    cf_ref[...] = jax.nn.sigmoid(o[:, 0].astype(jnp.float32)).astype(cf_ref.dtype)
    px_ref[...] = (o[:, 1].astype(jnp.float32) * inv_c + gx).astype(px_ref.dtype)
    py_ref[...] = (o[:, 2].astype(jnp.float32) * inv_c + gy).astype(py_ref.dtype)


# ----------------------------------------------------------------------------
# Generation-aware sizing helpers
# ----------------------------------------------------------------------------

def _ceil_to(n, m):
    return -(-n // m) * m


def _sublane(dtype):
    # Second-minor (sublane) packing granularity: 8 for 32-bit, 16 for 16-bit.
    return max(8, 32 // jnp.dtype(dtype).itemsize)


def _hw_params():
    """Return (vmem_capacity_bytes, per-block input-byte target)."""
    vmem_cap = 128 << 20
    try:
        vmem_cap = int(getattr(pltpu.get_tpu_info(), "vmem_capacity_bytes",
                               vmem_cap))
    except Exception:
        pass
    kind = ""
    try:
        kind = jax.devices()[0].device_kind.lower()
    except Exception:
        pass
    if "v5 lite" in kind or "v5e" in kind or "v5litepod" in kind:
        target = 2 << 20          # v5e: ~0.8 TB/s -> 2 MiB already amortizes step overhead
    elif vmem_cap <= (64 << 20):
        target = 6 << 20          # v7x-class: 3.2 TB/s HBM, 64 MiB VMEM -> bigger blocks
    else:
        target = 8 << 20          # v6e-class: 128 MiB VMEM
    return vmem_cap, target


def _vmem_limit_bytes(est_bytes, vmem_cap):
    # Never below the computed requirement; generous headroom; capped at the
    # chip's physical VMEM (generation-aware, not a hardcoded 64 MiB).
    return int(min(vmem_cap, max(2 * est_bytes, 16 << 20)))


def _choose_tiles_cf(nB, nV, HW, in_itemsize, target_bytes, min_steps=4):
    """Pick (Bt, Thw) for the channel-first kernel."""
    bytes_per_col = 3 * nV * in_itemsize
    if HW % 128 == 0:
        floor = 512 if HW % 512 == 0 else 128   # avoid tiny strided-DMA chunks
        cands = [t for t in range(floor, HW + 1, floor) if HW % t == 0] or [HW]
    else:
        cands = [HW]                            # full extent always legal
    configs = [(bt, thw) for thw in cands
               for bt in range(1, nB + 1) if nB % bt == 0]
    blk = lambda bt, thw: bt * bytes_per_col * thw
    steps = lambda bt, thw: (nB // bt) * (HW // thw)
    # 1) within the byte target AND enough steps for pipeline overlap /
    #    megacore sharding: largest block (prefer full rows, fold batch).
    ok = [c for c in configs if blk(*c) <= target_bytes and steps(*c) >= min_steps]
    if ok:
        ok2 = [c for c in ok if (nB // c[0]) >= min(2, nB)]   # >=2 batch steps
        return max(ok2 or ok, key=lambda c: (blk(*c), c[1]))
    # 2) within the target but min_steps unreachable: never collapse to a
    #    1-step grid when avoidable -- maximize steps, then block size.
    ok = [c for c in configs if blk(*c) <= target_bytes]
    if ok:
        return max(ok, key=lambda c: (steps(*c), blk(*c)))
    # 3) nothing fits the target (huge nV*HW): smallest legal block.
    return min(configs, key=lambda c: blk(*c))


def _choose_th(nB, nV, nH, nW, in_itemsize, target_bytes, min_steps=4):
    """Pick the nH tile (Th) for the NHWV kernel (batch tile fixed at 1)."""
    cands = [nH] + [t for t in range(8, nH, 8) if nH % t == 0]
    row_bytes = 3 * nV * nW * in_itemsize
    ok = [t for t in cands
          if t * row_bytes <= target_bytes and nB * (nH // t) >= min_steps]
    if ok:
        return max(ok)
    ok = [t for t in cands if t * row_bytes <= target_bytes]
    if ok:
        return max(ok, key=lambda t: (nB * (nH // t), t))
    return min(cands)


def _est_vmem_cf(Bt, nV, Thw, in_dtype, out_dtype):
    in_is = jnp.dtype(in_dtype).itemsize
    out_is = jnp.dtype(out_dtype).itemsize
    lane = _ceil_to(Thw, 128)
    in_blk = Bt * 3 * _ceil_to(nV, _sublane(in_dtype)) * lane * in_is
    out_blk = 3 * Bt * _ceil_to(nV, _sublane(out_dtype)) * lane * out_is
    gxy = 8 * lane * 4
    return 2 * (in_blk + out_blk + gxy)           # double-buffered


def _est_vmem_nhwv(nV, Th, nW, M, in_dtype, out_dtype):
    in_is = jnp.dtype(in_dtype).itemsize
    out_is = jnp.dtype(out_dtype).itemsize
    in_blk = 3 * nV * _ceil_to(Th, _sublane(in_dtype)) * _ceil_to(nW, 128) * in_is
    a_blk = nV * _ceil_to(nW, _sublane(in_dtype)) * _ceil_to(M, 128) * in_is
    out_blk = 3 * _ceil_to(Th, _sublane(out_dtype)) * _ceil_to(M, 128) * out_is
    gxy = 8 * _ceil_to(M, 128) * 4 + _ceil_to(Th, 8) * 128 * 4
    return 2 * (in_blk + a_blk + out_blk + gxy)   # double-buffered


# ----------------------------------------------------------------------------
# Forward wrapper
# ----------------------------------------------------------------------------

def pose2d_forward(output, keypoints, *, num_keypoints, coord_norm_factor=10.0,
                   out_dtype=jnp.float32, nhwv_layout=True):
    """Eval-branch forward of Pose2DLayer (num_anchors == 1).

    output: conv feature map, NCHW (nB, 3*nV, nH, nW), any float dtype (bf16
    recommended -- arithmetic is done in f32 inside the kernel).
    Returns [px, py, conf, keypoints].  px/py/conf are (nB, nH, nW, nV) when
    nhwv_layout=True (PyTorch eval layout, emitted directly by the kernel --
    no post-kernel transpose pass), else channel-first (nB, nV, nH, nW)
    (leanest path: pure streaming, zero layout work).  Pass
    out_dtype=jnp.bfloat16 when downstream tolerates it to cut write bytes 2x.
    """
    nB, C, nH, nW = output.shape
    nV = num_keypoints
    assert C == 3 * nV, "channel dim must be num_anchors(=1) * 3 * num_keypoints"
    # TODO(synk): num_anchors > 1 and the training branch (build_targets with
    # data-dependent GT loops + L1/SmoothL1 losses) have no Pallas path here.
    HW = nH * nW
    inv_c = 1.0 / float(coord_norm_factor)
    in_dt = output.dtype
    in_is = jnp.dtype(in_dt).itemsize
    out_is = jnp.dtype(out_dtype).itemsize
    vmem_cap, target_bytes = _hw_params()

    if nhwv_layout:
        # ---- NHWV emitted directly by the kernel (MXU one-hot scatter). ----
        M = nW * nV
        Th = _choose_th(nB, nV, nH, nW, in_is, target_bytes)
        grid = (nB, nH // Th)

        # One-hot scatter matrix A[v, w, w*nV + v] = 1 (exact in any float dtype).
        m_tgt = (jnp.arange(nW, dtype=jnp.int32)[None, :] * nV
                 + jnp.arange(nV, dtype=jnp.int32)[:, None])            # (nV, nW)
        A = (jnp.arange(M, dtype=jnp.int32)[None, None, :] == m_tgt[:, :, None]
             ).astype(in_dt)                                            # (nV, nW, M)
        # Grid offsets: gx in the interleaved (w*nV + v) layout, gy per row h.
        gx = (((jnp.arange(M, dtype=jnp.int32) // nV).astype(jnp.float32) + 0.5)
              * (1.0 / nW)).reshape(1, M)
        gy = ((jnp.arange(nH, dtype=jnp.float32) + 0.5) * (1.0 / nH)).reshape(nH, 1)

        est = _est_vmem_nhwv(nV, Th, nW, M, in_dt, out_dtype)
        cost = pl.CostEstimate(
            flops=6 * nB * nH * M * nW * nV + 12 * nB * nH * M,
            transcendentals=nB * nH * M,
            bytes_accessed=(nB * C * HW * in_is + 3 * nB * nH * M * out_is
                            + A.size * in_is + (M + nH) * 4))

        kernel = functools.partial(_pose2d_nhwv_kernel, inv_c=inv_c, nV=nV)
        out_sds = jax.ShapeDtypeStruct((nB, nH, M), out_dtype)
        px, py, conf = pl.pallas_call(
            kernel,
            grid=grid,
            in_specs=[
                pl.BlockSpec((1, C, Th, nW), lambda b, h: (b, 0, h, 0)),
                pl.BlockSpec((nV, nW, M), lambda b, h: (0, 0, 0)),
                pl.BlockSpec((1, M), lambda b, h: (0, 0)),
                pl.BlockSpec((Th, 1), lambda b, h: (h, 0)),
            ],
            out_specs=[pl.BlockSpec((1, Th, M), lambda b, h: (b, h, 0))] * 3,
            out_shape=[out_sds, out_sds, out_sds],
            compiler_params=pltpu.CompilerParams(
                dimension_semantics=("parallel", "parallel"),
                vmem_limit_bytes=_vmem_limit_bytes(est, vmem_cap)),
            cost_estimate=cost,
        )(output, A, gx, gy)
        # Free (metadata-only) reshapes to the PyTorch eval layout.
        px = px.reshape(nB, nH, nW, nV)
        py = py.reshape(nB, nH, nW, nV)
        conf = conf.reshape(nB, nH, nW, nV)
    else:
        # ---- Channel-first fast path: pure streaming. ----
        o4 = output.reshape(nB, 3, nV, HW)       # free reshape of contiguous NCHW
        Bt, Thw = _choose_tiles_cf(nB, nV, HW, in_is, target_bytes)
        grid = (nB // Bt, HW // Thw)

        col = jnp.arange(HW, dtype=jnp.int32)
        gxy = jnp.stack(
            [((col % nW).astype(jnp.float32) + 0.5) * (1.0 / nW),
             ((col // nW).astype(jnp.float32) + 0.5) * (1.0 / nH)], axis=0)  # (2, HW)

        est = _est_vmem_cf(Bt, nV, Thw, in_dt, out_dtype)
        cost = pl.CostEstimate(
            flops=12 * nB * nV * HW,
            transcendentals=nB * nV * HW,
            bytes_accessed=nB * C * HW * in_is + 3 * nB * nV * HW * out_is + 2 * HW * 4)

        kernel = functools.partial(_pose2d_cf_kernel, inv_c=inv_c)
        out_sds = jax.ShapeDtypeStruct((nB, nV, HW), out_dtype)
        px, py, conf = pl.pallas_call(
            kernel,
            grid=grid,
            in_specs=[
                pl.BlockSpec((Bt, 3, nV, Thw), lambda b, s: (b, 0, 0, s)),
                pl.BlockSpec((2, Thw), lambda b, s: (0, s)),
            ],
            out_specs=[pl.BlockSpec((Bt, nV, Thw), lambda b, s: (b, 0, s))] * 3,
            out_shape=[out_sds, out_sds, out_sds],
            compiler_params=pltpu.CompilerParams(
                dimension_semantics=("parallel", "parallel"),
                vmem_limit_bytes=_vmem_limit_bytes(est, vmem_cap)),
            cost_estimate=cost,
        )(o4, gxy)
        px = px.reshape(nB, nV, nH, nW)
        py = py.reshape(nB, nV, nH, nW)
        conf = conf.reshape(nB, nV, nH, nW)

    return [px, py, conf, keypoints]


# ----------------------------------------------------------------------------
# Pure-JAX reference of the PyTorch eval branch (nA = 1)
# ----------------------------------------------------------------------------

def _reference(output, nV, coord_norm_factor=10.0):
    nB, _, nH, nW = output.shape
    out = output.astype(jnp.float32)
    conf = jax.nn.sigmoid(out[:, 0:nV]).transpose(0, 2, 3, 1)
    x = out[:, nV:2 * nV].transpose(0, 2, 3, 1)
    y = out[:, 2 * nV:3 * nV].transpose(0, 2, 3, 1)
    gx = (jnp.arange(nW, dtype=jnp.float32) + 0.5) / nW * coord_norm_factor
    gy = (jnp.arange(nH, dtype=jnp.float32) + 0.5) / nH * coord_norm_factor
    px = (x + gx[None, None, :, None]) / coord_norm_factor
    py = (y + gy[None, :, None, None]) / coord_norm_factor
    return px, py, conf


if __name__ == "__main__":
    # Small shapes consistent with the module: nB=2, nA=1, nV=8 keypoints,
    # nH=nW=16  ->  input channels = nA*3*nV = 24.
    nB, nV, nH, nW = 2, 8, 16, 16
    num_classes = 4

    key = jax.random.PRNGKey(0)
    k_out, k_kpt = jax.random.split(key)
    x = jax.random.normal(k_out, (nB, 3 * nV, nH, nW), dtype=jnp.float32)
    x = x.astype(jnp.bfloat16)            # conv output in its native (bf16) dtype
    # Deterministic stand-in for np.load(keypointsfile)[:, :num_keypoints, :].
    keypoints = jax.random.normal(k_kpt, (num_classes, nV, 3), dtype=jnp.float32)

    rx, ry, rconf = _reference(x, nV)

    # 1) Default path: PyTorch eval layout (nB, nH, nW, nV), f32 out, NHWV
    #    emitted directly by the kernel (no post-kernel transpose pass).
    fwd = jax.jit(functools.partial(pose2d_forward, num_keypoints=nV))
    px, py, conf, kpts = jax.block_until_ready(fwd(x, keypoints))
    assert px.shape == (nB, nH, nW, nV) and py.shape == (nB, nH, nW, nV)
    assert conf.shape == (nB, nH, nW, nV) and kpts.shape == (num_classes, nV, 3)
    assert jnp.allclose(px, rx, atol=1e-5, rtol=1e-5)
    assert jnp.allclose(py, ry, atol=1e-5, rtol=1e-5)
    assert jnp.allclose(conf, rconf, atol=1e-5, rtol=1e-5)

    # 2) Channel-first fast path (leanest: pure streaming, zero layout work).
    fwd_cf = jax.jit(functools.partial(pose2d_forward, num_keypoints=nV,
                                       nhwv_layout=False))
    pxc, pyc, confc, _ = jax.block_until_ready(fwd_cf(x, keypoints))
    assert pxc.shape == (nB, nV, nH, nW)
    assert jnp.allclose(pxc, rx.transpose(0, 3, 1, 2), atol=1e-5, rtol=1e-5)
    assert jnp.allclose(pyc, ry.transpose(0, 3, 1, 2), atol=1e-5, rtol=1e-5)
    assert jnp.allclose(confc, rconf.transpose(0, 3, 1, 2), atol=1e-5, rtol=1e-5)

    # 3) bf16 output (recommended when downstream tolerates it: ~33% fewer
    #    HBM bytes for this bandwidth-bound op).
    fwd_bf16 = jax.jit(functools.partial(pose2d_forward, num_keypoints=nV,
                                         out_dtype=jnp.bfloat16))
    pxb, pyb, confb, _ = jax.block_until_ready(fwd_bf16(x, keypoints))
    assert pxb.dtype == jnp.bfloat16
    assert jnp.allclose(pxb.astype(jnp.float32), rx, atol=3e-2, rtol=3e-2)
    assert jnp.allclose(pyb.astype(jnp.float32), ry, atol=3e-2, rtol=3e-2)
    assert jnp.allclose(confb.astype(jnp.float32), rconf, atol=3e-2, rtol=3e-2)

    print("KERNEL_OK")
</pallas_src>

<mosaic_0001>
module attributes {stable_mosaic.version = 11 : i64} {
  func.func @_pose2d_nhwv_kernel(%arg0: i32, %arg1: i32, %arg2: memref<1x24x8x16xbf16, #tpu.memory_space<vmem>>, %arg3: memref<8x16x128xbf16, #tpu.memory_space<vmem>>, %arg4: memref<1x128xf32, #tpu.memory_space<vmem>>, %arg5: memref<8x1xf32, #tpu.memory_space<vmem>>, %arg6: memref<1x8x128xf32, #tpu.memory_space<vmem>>, %arg7: memref<1x8x128xf32, #tpu.memory_space<vmem>>, %arg8: memref<1x8x128xf32, #tpu.memory_space<vmem>>) attributes {dimension_semantics = [#tpu.dimension_semantics<parallel>, #tpu.dimension_semantics<parallel>], iteration_bounds = array<i64: 2, 2>, scalar_prefetch = 0 : i64, scratch_operands = 0 : i64, tpu.core_type = #tpu.core_type<tc>, window_params = [{transform_indices = @transform_0, window_bounds = array<i64: 1, 24, 8, 16>}, {pipeline_mode = #tpu.pipeline_mode<synchronous>, transform_indices = @transform_1, window_bounds = array<i64: 8, 16, 128>}, {pipeline_mode = #tpu.pipeline_mode<synchronous>, transform_indices = @transform_2, window_bounds = array<i64: 1, 128>}, {transform_indices = @transform_3, window_bounds = array<i64: 8, 1>}, {transform_indices = @transform_4, window_bounds = array<i64: 1, 8, 128>}, {transform_indices = @transform_5, window_bounds = array<i64: 1, 8, 128>}, {transform_indices = @transform_6, window_bounds = array<i64: 1, 8, 128>}]} {
    %cst = arith.constant 0.000000e+00 : f32
    %0 = vector.broadcast %cst : f32 to vector<8x128xf32>
    %cst_0 = arith.constant 0.000000e+00 : f32
    %1 = vector.broadcast %cst_0 : f32 to vector<8x128xf32>
    %cst_1 = arith.constant 0.000000e+00 : f32
    %2 = vector.broadcast %cst_1 : f32 to vector<8x128xf32>
    %c0 = arith.constant 0 : index
    %c0_2 = arith.constant 0 : index
    %c0_3 = arith.constant 0 : index
    %3 = vector.load %arg3[%c0, %c0_2, %c0_3] : memref<8x16x128xbf16, #tpu.memory_space<vmem>>, vector<1x16x128xbf16>
    %4 = vector.shape_cast %3 : vector<1x16x128xbf16> to vector<16x128xbf16>
    %c0_4 = arith.constant 0 : index
    %c0_5 = arith.constant 0 : index
    %c0_6 = arith.constant 0 : index
    %c0_7 = arith.constant 0 : index
    %5 = vector.load %arg2[%c0_4, %c0_5, %c0_6, %c0_7] : memref<1x24x8x16xbf16, #tpu.memory_space<vmem>>, vector<1x1x8x16xbf16>
    %6 = vector.shape_cast %5 : vector<1x1x8x16xbf16> to vector<8x16xbf16>
    %cst_8 = arith.constant dense<0.000000e+00> : vector<8x128xf32>
    %7 = tpu.matmul %6, %4, %cst_8 {dimension_numbers = #tpu.dot_dimension_numbers<[1], [0], [0], [1], [0, 0, 1, 1], [], []>} : vector<8x16xbf16>, vector<16x128xbf16>, vector<8x128xf32> -> vector<8x128xf32>
    %8 = arith.addf %0, %7 : vector<8x128xf32>
    %c0_9 = arith.constant 0 : index
    %c8 = arith.constant 8 : index
    %c0_10 = arith.constant 0 : index
    %c0_11 = arith.constant 0 : index
    %9 = vector.load %arg2[%c0_9, %c8, %c0_10, %c0_11] : memref<1x24x8x16xbf16, #tpu.memory_space<vmem>>, vector<1x1x8x16xbf16>
    %10 = vector.shape_cast %9 : vector<1x1x8x16xbf16> to vector<8x16xbf16>
    %cst_12 = arith.constant dense<0.000000e+00> : vector<8x128xf32>
    %11 = tpu.matmul %10, %4, %cst_12 {dimension_numbers = #tpu.dot_dimension_numbers<[1], [0], [0], [1], [0, 0, 1, 1], [], []>} : vector<8x16xbf16>, vector<16x128xbf16>, vector<8x128xf32> -> vector<8x128xf32>
    %12 = arith.addf %1, %11 : vector<8x128xf32>
    %c0_13 = arith.constant 0 : index
    %c16 = arith.constant 16 : index
    %c0_14 = arith.constant 0 : index
    %c0_15 = arith.constant 0 : index
    %13 = vector.load %arg2[%c0_13, %c16, %c0_14, %c0_15] : memref<1x24x8x16xbf16, #tpu.memory_space<vmem>>, vector<1x1x8x16xbf16>
    %14 = vector.shape_cast %13 : vector<1x1x8x16xbf16> to vector<8x16xbf16>
    %cst_16 = arith.constant dense<0.000000e+00> : vector<8x128xf32>
    %15 = tpu.matmul %14, %4, %cst_16 {dimension_numbers = #tpu.dot_dimension_numbers<[1], [0], [0], [1], [0, 0, 1, 1], [], []>} : vector<8x16xbf16>, vector<16x128xbf16>, vector<8x128xf32> -> vector<8x128xf32>
    %16 = arith.addf %2, %15 : vector<8x128xf32>
    %c1 = arith.constant 1 : index
    %c0_17 = arith.constant 0 : index
    %c0_18 = arith.constant 0 : index
    %17 = vector.load %arg3[%c1, %c0_17, %c0_18] : memref<8x16x128xbf16, #tpu.memory_space<vmem>>, vector<1x16x128xbf16>
    %18 = vector.shape_cast %17 : vector<1x16x128xbf16> to vector<16x128xbf16>
    %c0_19 = arith.constant 0 : index
    %c1_20 = arith.constant 1 : index
    %c0_21 = arith.constant 0 : index
    %c0_22 = arith.constant 0 : index
    %19 = vector.load %arg2[%c0_19, %c1_20, %c0_21, %c0_22] : memref<1x24x8x16xbf16, #tpu.memory_space<vmem>>, vector<1x1x8x16xbf16>
    %20 = vector.shape_cast %19 : vector<1x1x8x16xbf16> to vector<8x16xbf16>
    %cst_23 = arith.constant dense<0.000000e+00> : vector<8x128xf32>
    %21 = tpu.matmul %20, %18, %cst_23 {dimension_numbers = #tpu.dot_dimension_numbers<[1], [0], [0], [1], [0, 0, 1, 1], [], []>} : vector<8x16xbf16>, vector<16x128xbf16>, vector<8x128xf32> -> vector<8x128xf32>
    %22 = arith.addf %8, %21 : vector<8x128xf32>
    %c0_24 = arith.constant 0 : index
    %c9 = arith.constant 9 : index
    %c0_25 = arith.constant 0 : index
    %c0_26 = arith.constant 0 : index
    %23 = vector.load %arg2[%c0_24, %c9, %c0_25, %c0_26] : memref<1x24x8x16xbf16, #tpu.memory_space<vmem>>, vector<1x1x8x16xbf16>
    %24 = vector.shape_cast %23 : vector<1x1x8x16xbf16> to vector<8x16xbf16>
    %cst_27 = arith.constant dense<0.000000e+00> : vector<8x128xf32>
    %25 = tpu.matmul %24, %18, %cst_27 {dimension_numbers = #tpu.dot_dimension_numbers<[1], [0], [0], [1], [0, 0, 1, 1], [], []>} : vector<8x16xbf16>, vector<16x128xbf16>, vector<8x128xf32> -> vector<8x128xf32>
    %26 = arith.addf %12, %25 : vector<8x128xf32>
    %c0_28 = arith.constant 0 : index
    %c17 = arith.constant 17 : index
    %c0_29 = arith.constant 0 : index
    %c0_30 = arith.constant 0 : index
    %27 = vector.load %arg2[%c0_28, %c17, %c0_29, %c0_30] : memref<1x24x8x16xbf16, #tpu.memory_space<vmem>>, vector<1x1x8x16xbf16>
    %28 = vector.shape_cast %27 : vector<1x1x8x16xbf16> to vector<8x16xbf16>
    %cst_31 = arith.constant dense<0.000000e+00> : vector<8x128xf32>
    %29 = tpu.matmul %28, %18, %cst_31 {dimension_numbers = #tpu.dot_dimension_numbers<[1], [0], [0], [1], [0, 0, 1, 1], [], []>} : vector<8x16xbf16>, vector<16x128xbf16>, vector<8x128xf32> -> vector<8x128xf32>
    %30 = arith.addf %16, %29 : vector<8x128xf32>
    %c2 = arith.constant 2 : index
    %c0_32 = arith.constant 0 : index
    %c0_33 = arith.constant 0 : index
    %31 = vector.load %arg3[%c2, %c0_32, %c0_33] : memref<8x16x128xbf16, #tpu.memory_space<vmem>>, vector<1x16x128xbf16>
    %32 = vector.shape_cast %31 : vector<1x16x128xbf16> to vector<16x128xbf16>
    %c0_34 = arith.constant 0 : index
    %c2_35 = arith.constant 2 : index
    %c0_36 = arith.constant 0 : index
    %c0_37 = arith.constant 0 : index
    %33 = vector.load %arg2[%c0_34, %c2_35, %c0_36, %c0_37] : memref<1x24x8x16xbf16, #tpu.memory_space<vmem>>, vector<1x1x8x16xbf16>
    %34 = vector.shape_cast %33 : vector<1x1x8x16xbf16> to vector<8x16xbf16>
    %cst_38 = arith.constant dense<0.000000e+00> : vector<8x128xf32>
    %35 = tpu.matmul %34, %32, %cst_38 {dimension_numbers = #tpu.dot_dimension_numbers<[1], [0], [0], [1], [0, 0, 1, 1], [], []>} : vector<8x16xbf16>, vector<16x128xbf16>, vector<8x128xf32> -> vector<8x128xf32>
    %36 = arith.addf %22, %35 : vector<8x128xf32>
    %c0_39 = arith.constant 0 : index
    %c10 = arith.constant 10 : index
    %c0_40 = arith.constant 0 : index
    %c0_41 = arith.constant 0 : index
    %37 = vector.load %arg2[%c0_39, %c10, %c0_40, %c0_41] : memref<1x24x8x16xbf16, #tpu.memory_space<vmem>>, vector<1x1x8x16xbf16>
    %38 = vector.shape_cast %37 : vector<1x1x8x16xbf16> to vector<8x16xbf16>
    %cst_42 = arith.constant dense<0.000000e+00> : vector<8x128xf32>
    %39 = tpu.matmul %38, %32, %cst_42 {dimension_numbers = #tpu.dot_dimension_numbers<[1], [0], [0], [1], [0, 0, 1, 1], [], []>} : vector<8x16xbf16>, vector<16x128xbf16>, vector<8x128xf32> -> vector<8x128xf32>
    %40 = arith.addf %26, %39 : vector<8x128xf32>
    %c0_43 = arith.constant 0 : index
    %c18 = arith.constant 18 : index
    %c0_44 = arith.constant 0 : index
    %c0_45 = arith.constant 0 : index
    %41 = vector.load %arg2[%c0_43, %c18, %c0_44, %c0_45] : memref<1x24x8x16xbf16, #tpu.memory_space<vmem>>, vector<1x1x8x16xbf16>
    %42 = vector.shape_cast %41 : vector<1x1x8x16xbf16> to vector<8x16xbf16>
    %cst_46 = arith.constant dense<0.000000e+00> : vector<8x128xf32>
    %43 = tpu.matmul %42, %32, %cst_46 {dimension_numbers = #tpu.dot_dimension_numbers<[1], [0], [0], [1], [0, 0, 1, 1], [], []>} : vector<8x16xbf16>, vector<16x128xbf16>, vector<8x128xf32> -> vector<8x128xf32>
    %44 = arith.addf %30, %43 : vector<8x128xf32>
    %c3 = arith.constant 3 : index
    %c0_47 = arith.constant 0 : index
    %c0_48 = arith.constant 0 : index
    %45 = vector.load %arg3[%c3, %c0_47, %c0_48] : memref<8x16x128xbf16, #tpu.memory_space<vmem>>, vector<1x16x128xbf16>
    %46 = vector.shape_cast %45 : vector<1x16x128xbf16> to vector<16x128xbf16>
    %c0_49 = arith.constant 0 : index
    %c3_50 = arith.constant 3 : index
    %c0_51 = arith.constant 0 : index
    %c0_52 = arith.constant 0 : index
    %47 = vector.load %arg2[%c0_49, %c3_50, %c0_51, %c0_52] : memref<1x24x8x16xbf16, #tpu.memory_space<vmem>>, vector<1x1x8x16xbf16>
    %48 = vector.shape_cast %47 : vector<1x1x8x16xbf16> to vector<8x16xbf16>
    %cst_53 = arith.constant dense<0.000000e+00> : vector<8x128xf32>
    %49 = tpu.matmul %48, %46, %cst_53 {dimension_numbers = #tpu.dot_dimension_numbers<[1], [0], [0], [1], [0, 0, 1, 1], [], []>} : vector<8x16xbf16>, vector<16x128xbf16>, vector<8x128xf32> -> vector<8x128xf32>
    %50 = arith.addf %36, %49 : vector<8x128xf32>
    %c0_54 = arith.constant 0 : index
    %c11 = arith.constant 11 : index
    %c0_55 = arith.constant 0 : index
    %c0_56 = arith.constant 0 : index
    %51 = vector.load %arg2[%c0_54, %c11, %c0_55, %c0_56] : memref<1x24x8x16xbf16, #tpu.memory_space<vmem>>, vector<1x1x8x16xbf16>
    %52 = vector.shape_cast %51 : vector<1x1x8x16xbf16> to vector<8x16xbf16>
    %cst_57 = arith.constant dense<0.000000e+00> : vector<8x128xf32>
    %53 = tpu.matmul %52, %46, %cst_57 {dimension_numbers = #tpu.dot_dimension_numbers<[1], [0], [0], [1], [0, 0, 1, 1], [], []>} : vector<8x16xbf16>, vector<16x128xbf16>, vector<8x128xf32> -> vector<8x128xf32>
    %54 = arith.addf %40, %53 : vector<8x128xf32>
    %c0_58 = arith.constant 0 : index
    %c19 = arith.constant 19 : index
    %c0_59 = arith.constant 0 : index
    %c0_60 = arith.constant 0 : index
    %55 = vector.load %arg2[%c0_58, %c19, %c0_59, %c0_60] : memref<1x24x8x16xbf16, #tpu.memory_space<vmem>>, vector<1x1x8x16xbf16>
    %56 = vector.shape_cast %55 : vector<1x1x8x16xbf16> to vector<8x16xbf16>
    %cst_61 = arith.constant dense<0.000000e+00> : vector<8x128xf32>
    %57 = tpu.matmul %56, %46, %cst_61 {dimension_numbers = #tpu.dot_dimension_numbers<[1], [0], [0], [1], [0, 0, 1, 1], [], []>} : vector<8x16xbf16>, vector<16x128xbf16>, vector<8x128xf32> -> vector<8x128xf32>
    %58 = arith.addf %44, %57 : vector<8x128xf32>
    %c4 = arith.constant 4 : index
    %c0_62 = arith.constant 0 : index
    %c0_63 = arith.constant 0 : index
    %59 = vector.load %arg3[%c4, %c0_62, %c0_63] : memref<8x16x128xbf16, #tpu.memory_space<vmem>>, vector<1x16x128xbf16>
    %60 = vector.shape_cast %59 : vector<1x16x128xbf16> to vector<16x128xbf16>
    %c0_64 = arith.constant 0 : index
    %c4_65 = arith.constant 4 : index
    %c0_66 = arith.constant 0 : index
    %c0_67 = arith.constant 0 : index
    %61 = vector.load %arg2[%c0_64, %c4_65, %c0_66, %c0_67] : memref<1x24x8x16xbf16, #tpu.memory_space<vmem>>, vector<1x1x8x16xbf16>
    %62 = vector.shape_cast %61 : vector<1x1x8x16xbf16> to vector<8x16xbf16>
    %cst_68 = arith.constant dense<0.000000e+00> : vector<8x128xf32>
    %63 = tpu.matmul %62, %60, %cst_68 {dimension_numbers = #tpu.dot_dimension_numbers<[1], [0], [0], [1], [0, 0, 1, 1], [], []>} : vector<8x16xbf16>, vector<16x128xbf16>, vector<8x128xf32> -> vector<8x128xf32>
    %64 = arith.addf %50, %63 : vector<8x128xf32>
    %c0_69 = arith.constant 0 : index
    %c12 = arith.constant 12 : index
    %c0_70 = arith.constant 0 : index
    %c0_71 = arith.constant 0 : index
    %65 = vector.load %arg2[%c0_69, %c12, %c0_70, %c0_71] : memref<1x24x8x16xbf16, #tpu.memory_space<vmem>>, vector<1x1x8x16xbf16>
    %66 = vector.shape_cast %65 : vector<1x1x8x16xbf16> to vector<8x16xbf16>
    %cst_72 = arith.constant dense<0.000000e+00> : vector<8x128xf32>
    %67 = tpu.matmul %66, %60, %cst_72 {dimension_numbers = #tpu.dot_dimension_numbers<[1], [0], [0], [1], [0, 0, 1, 1], [], []>} : vector<8x16xbf16>, vector<16x128xbf16>, vector<8x128xf32> -> vector<8x128xf32>
    %68 = arith.addf %54, %67 : vector<8x128xf32>
    %c0_73 = arith.constant 0 : index
    %c20 = arith.constant 20 : index
    %c0_74 = arith.constant 0 : index
    %c0_75 = arith.constant 0 : index
    %69 = vector.load %arg2[%c0_73, %c20, %c0_74, %c0_75] : memref<1x24x8x16xbf16, #tpu.memory_space<vmem>>, vector<1x1x8x16xbf16>
    %70 = vector.shape_cast %69 : vector<1x1x8x16xbf16> to vector<8x16xbf16>
    %cst_76 = arith.constant dense<0.000000e+00> : vector<8x128xf32>
    %71 = tpu.matmul %70, %60, %cst_76 {dimension_numbers = #tpu.dot_dimension_numbers<[1], [0], [0], [1], [0, 0, 1, 1], [], []>} : vector<8x16xbf16>, vector<16x128xbf16>, vector<8x128xf32> -> vector<8x128xf32>
    %72 = arith.addf %58, %71 : vector<8x128xf32>
    %c5 = arith.constant 5 : index
    %c0_77 = arith.constant 0 : index
    %c0_78 = arith.constant 0 : index
    %73 = vector.load %arg3[%c5, %c0_77, %c0_78] : memref<8x16x128xbf16, #tpu.memory_space<vmem>>, vector<1x16x128xbf16>
    %74 = vector.shape_cast %73 : vector<1x16x128xbf16> to vector<16x128xbf16>
    %c0_79 = arith.constant 0 : index
    %c5_80 = arith.constant 5 : index
    %c0_81 = arith.constant 0 : index
    %c0_82 = arith.constant 0 : index
    %75 = vector.load %arg2[%c0_79, %c5_80, %c0_81, %c0_82] : memref<1x24x8x16xbf16, #tpu.memory_space<vmem>>, vector<1x1x8x16xbf16>
    %76 = vector.shape_cast %75 : vector<1x1x8x16xbf16> to vector<8x16xbf16>
    %cst_83 = arith.constant dense<0.000000e+00> : vector<8x128xf32>
    %77 = tpu.matmul %76, %74, %cst_83 {dimension_numbers = #tpu.dot_dimension_numbers<[1], [0], [0], [1], [0, 0, 1, 1], [], []>} : vector<8x16xbf16>, vector<16x128xbf16>, vector<8x128xf32> -> vector<8x128xf32>
    %78 = arith.addf %64, %77 : vector<8x128xf32>
    %c0_84 = arith.constant 0 : index
    %c13 = arith.constant 13 : index
    %c0_85 = arith.constant 0 : index
    %c0_86 = arith.constant 0 : index
    %79 = vector.load %arg2[%c0_84, %c13, %c0_85, %c0_86] : memref<1x24x8x16xbf16, #tpu.memory_space<vmem>>, vector<1x1x8x16xbf16>
    %80 = vector.shape_cast %79 : vector<1x1x8x16xbf16> to vector<8x16xbf16>
    %cst_87 = arith.constant dense<0.000000e+00> : vector<8x128xf32>
    %81 = tpu.matmul %80, %74, %cst_87 {dimension_numbers = #tpu.dot_dimension_numbers<[1], [0], [0], [1], [0, 0, 1, 1], [], []>} : vector<8x16xbf16>, vector<16x128xbf16>, vector<8x128xf32> -> vector<8x128xf32>
    %82 = arith.addf %68, %81 : vector<8x128xf32>
    %c0_88 = arith.constant 0 : index
    %c21 = arith.constant 21 : index
    %c0_89 = arith.constant 0 : index
    %c0_90 = arith.constant 0 : index
    %83 = vector.load %arg2[%c0_88, %c21, %c0_89, %c0_90] : memref<1x24x8x16xbf16, #tpu.memory_space<vmem>>, vector<1x1x8x16xbf16>
    %84 = vector.shape_cast %83 : vector<1x1x8x16xbf16> to vector<8x16xbf16>
    %cst_91 = arith.constant dense<0.000000e+00> : vector<8x128xf32>
    %85 = tpu.matmul %84, %74, %cst_91 {dimension_numbers = #tpu.dot_dimension_numbers<[1], [0], [0], [1], [0, 0, 1, 1], [], []>} : vector<8x16xbf16>, vector<16x128xbf16>, vector<8x128xf32> -> vector<8x128xf32>
    %86 = arith.addf %72, %85 : vector<8x128xf32>
    %c6 = arith.constant 6 : index
    %c0_92 = arith.constant 0 : index
    %c0_93 = arith.constant 0 : index
    %87 = vector.load %arg3[%c6, %c0_92, %c0_93] : memref<8x16x128xbf16, #tpu.memory_space<vmem>>, vector<1x16x128xbf16>
    %88 = vector.shape_cast %87 : vector<1x16x128xbf16> to vector<16x128xbf16>
    %c0_94 = arith.constant 0 : index
    %c6_95 = arith.constant 6 : index
    %c0_96 = arith.constant 0 : index
    %c0_97 = arith.constant 0 : index
    %89 = vector.load %arg2[%c0_94, %c6_95, %c0_96, %c0_97] : memref<1x24x8x16xbf16, #tpu.memory_space<vmem>>, vector<1x1x8x16xbf16>
    %90 = vector.shape_cast %89 : vector<1x1x8x16xbf16> to vector<8x16xbf16>
    %cst_98 = arith.constant dense<0.000000e+00> : vector<8x128xf32>
    %91 = tpu.matmul %90, %88, %cst_98 {dimension_numbers = #tpu.dot_dimension_numbers<[1], [0], [0], [1], [0, 0, 1, 1], [], []>} : vector<8x16xbf16>, vector<16x128xbf16>, vector<8x128xf32> -> vector<8x128xf32>
    %92 = arith.addf %78, %91 : vector<8x128xf32>
    %c0_99 = arith.constant 0 : index
    %c14 = arith.constant 14 : index
    %c0_100 = arith.constant 0 : index
    %c0_101 = arith.constant 0 : index
    %93 = vector.load %arg2[%c0_99, %c14, %c0_100, %c0_101] : memref<1x24x8x16xbf16, #tpu.memory_space<vmem>>, vector<1x1x8x16xbf16>
    %94 = vector.shape_cast %93 : vector<1x1x8x16xbf16> to vector<8x16xbf16>
    %cst_102 = arith.constant dense<0.000000e+00> : vector<8x128xf32>
    %95 = tpu.matmul %94, %88, %cst_102 {dimension_numbers = #tpu.dot_dimension_numbers<[1], [0], [0], [1], [0, 0, 1, 1], [], []>} : vector<8x16xbf16>, vector<16x128xbf16>, vector<8x128xf32> -> vector<8x128xf32>
    %96 = arith.addf %82, %95 : vector<8x128xf32>
    %c0_103 = arith.constant 0 : index
    %c22 = arith.constant 22 : index
    %c0_104 = arith.constant 0 : index
    %c0_105 = arith.constant 0 : index
    %97 = vector.load %arg2[%c0_103, %c22, %c0_104, %c0_105] : memref<1x24x8x16xbf16, #tpu.memory_space<vmem>>, vector<1x1x8x16xbf16>
    %98 = vector.shape_cast %97 : vector<1x1x8x16xbf16> to vector<8x16xbf16>
    %cst_106 = arith.constant dense<0.000000e+00> : vector<8x128xf32>
    %99 = tpu.matmul %98, %88, %cst_106 {dimension_numbers = #tpu.dot_dimension_numbers<[1], [0], [0], [1], [0, 0, 1, 1], [], []>} : vector<8x16xbf16>, vector<16x128xbf16>, vector<8x128xf32> -> vector<8x128xf32>
    %100 = arith.addf %86, %99 : vector<8x128xf32>
    %c7 = arith.constant 7 : index
    %c0_107 = arith.constant 0 : index
    %c0_108 = arith.constant 0 : index
    %101 = vector.load %arg3[%c7, %c0_107, %c0_108] : memref<8x16x128xbf16, #tpu.memory_space<vmem>>, vector<1x16x128xbf16>
    %102 = vector.shape_cast %101 : vector<1x16x128xbf16> to vector<16x128xbf16>
    %c0_109 = arith.constant 0 : index
    %c7_110 = arith.constant 7 : index
    %c0_111 = arith.constant 0 : index
    %c0_112 = arith.constant 0 : index
    %103 = vector.load %arg2[%c0_109, %c7_110, %c0_111, %c0_112] : memref<1x24x8x16xbf16, #tpu.memory_space<vmem>>, vector<1x1x8x16xbf16>
    %104 = vector.shape_cast %103 : vector<1x1x8x16xbf16> to vector<8x16xbf16>
    %cst_113 = arith.constant dense<0.000000e+00> : vector<8x128xf32>
    %105 = tpu.matmul %104, %102, %cst_113 {dimension_numbers = #tpu.dot_dimension_numbers<[1], [0], [0], [1], [0, 0, 1, 1], [], []>} : vector<8x16xbf16>, vector<16x128xbf16>, vector<8x128xf32> -> vector<8x128xf32>
    %106 = arith.addf %92, %105 : vector<8x128xf32>
    %c0_114 = arith.constant 0 : index
    %c15 = arith.constant 15 : index
    %c0_115 = arith.constant 0 : index
    %c0_116 = arith.constant 0 : index
    %107 = vector.load %arg2[%c0_114, %c15, %c0_115, %c0_116] : memref<1x24x8x16xbf16, #tpu.memory_space<vmem>>, vector<1x1x8x16xbf16>
    %108 = vector.shape_cast %107 : vector<1x1x8x16xbf16> to vector<8x16xbf16>
    %cst_117 = arith.constant dense<0.000000e+00> : vector<8x128xf32>
    %109 = tpu.matmul %108, %102, %cst_117 {dimension_numbers = #tpu.dot_dimension_numbers<[1], [0], [0], [1], [0, 0, 1, 1], [], []>} : vector<8x16xbf16>, vector<16x128xbf16>, vector<8x128xf32> -> vector<8x128xf32>
    %110 = arith.addf %96, %109 : vector<8x128xf32>
    %c0_118 = arith.constant 0 : index
    %c23 = arith.constant 23 : index
    %c0_119 = arith.constant 0 : index
    %c0_120 = arith.constant 0 : index
    %111 = vector.load %arg2[%c0_118, %c23, %c0_119, %c0_120] : memref<1x24x8x16xbf16, #tpu.memory_space<vmem>>, vector<1x1x8x16xbf16>
    %112 = vector.shape_cast %111 : vector<1x1x8x16xbf16> to vector<8x16xbf16>
    %cst_121 = arith.constant dense<0.000000e+00> : vector<8x128xf32>
    %113 = tpu.matmul %112, %102, %cst_121 {dimension_numbers = #tpu.dot_dimension_numbers<[1], [0], [0], [1], [0, 0, 1, 1], [], []>} : vector<8x16xbf16>, vector<16x128xbf16>, vector<8x128xf32> -> vector<8x128xf32>
    %114 = arith.addf %100, %113 : vector<8x128xf32>
    %c0_122 = arith.constant 0 : index
    %c0_123 = arith.constant 0 : index
    %115 = vector.load %arg4[%c0_122, %c0_123] : memref<1x128xf32, #tpu.memory_space<vmem>>, vector<1x128xf32>
    %c0_124 = arith.constant 0 : index
    %c0_125 = arith.constant 0 : index
    %116 = vector.load %arg5[%c0_124, %c0_125] : memref<8x1xf32, #tpu.memory_space<vmem>>, vector<8x1xf32>
    %117 = arith.negf %106 : vector<8x128xf32>
    %118 = math.exp %117 : vector<8x128xf32>
    %cst_126 = arith.constant 1.000000e+00 : f32
    %119 = vector.broadcast %cst_126 : f32 to vector<8x128xf32>
    %120 = arith.addf %119, %118 : vector<8x128xf32>
    %121 = arith.divf %119, %120 : vector<8x128xf32>
    %c0_127 = arith.constant 0 : index
    %c0_128 = arith.constant 0 : index
    %c0_129 = arith.constant 0 : index
    %122 = vector.load %arg8[%c0_127, %c0_128, %c0_129] : memref<1x8x128xf32, #tpu.memory_space<vmem>>, vector<1x8x128xf32>
    %123 = vector.shape_cast %122 : vector<1x8x128xf32> to vector<8x128xf32>
    %124 = vector.shape_cast %121 : vector<8x128xf32> to vector<1x8x128xf32>
    tpu.vector_store %arg8[%c0_127, %c0_128, %c0_129], %124 {strides = array<i32>} : memref<1x8x128xf32, #tpu.memory_space<vmem>>, vector<1x8x128xf32>,
    %cst_130 = arith.constant 1.000000e-01 : f32
    %125 = vector.broadcast %cst_130 : f32 to vector<8x128xf32>
    %126 = arith.mulf %110, %125 : vector<8x128xf32>
    %127 = vector.broadcast %115 : vector<1x128xf32> to vector<8x128xf32>
    %128 = arith.addf %126, %127 : vector<8x128xf32>
    %c0_131 = arith.constant 0 : index
    %c0_132 = arith.constant 0 : index
    %c0_133 = arith.constant 0 : index
    %129 = vector.load %arg6[%c0_131, %c0_132, %c0_133] : memref<1x8x128xf32, #tpu.memory_space<vmem>>, vector<1x8x128xf32>
    %130 = vector.shape_cast %129 : vector<1x8x128xf32> to vector<8x128xf32>
    %131 = vector.shape_cast %128 : vector<8x128xf32> to vector<1x8x128xf32>
    tpu.vector_store %arg6[%c0_131, %c0_132, %c0_133], %131 {strides = array<i32>} : memref<1x8x128xf32, #tpu.memory_space<vmem>>, vector<1x8x128xf32>,
    %cst_134 = arith.constant 1.000000e-01 : f32
    %132 = vector.broadcast %cst_134 : f32 to vector<8x128xf32>
    %133 = arith.mulf %114, %132 : vector<8x128xf32>
    %134 = vector.broadcast %116 : vector<8x1xf32> to vector<8x128xf32>
    %135 = arith.addf %133, %134 : vector<8x128xf32>
    %c0_135 = arith.constant 0 : index
    %c0_136 = arith.constant 0 : index
    %c0_137 = arith.constant 0 : index
    %136 = vector.load %arg7[%c0_135, %c0_136, %c0_137] : memref<1x8x128xf32, #tpu.memory_space<vmem>>, vector<1x8x128xf32>
    %137 = vector.shape_cast %136 : vector<1x8x128xf32> to vector<8x128xf32>
    %138 = vector.shape_cast %135 : vector<8x128xf32> to vector<1x8x128xf32>
    tpu.vector_store %arg7[%c0_135, %c0_136, %c0_137], %138 {strides = array<i32>} : memref<1x8x128xf32, #tpu.memory_space<vmem>>, vector<1x8x128xf32>,
    return
  }
  func.func @transform_0(%arg0: i32, %arg1: i32) -> (i32, i32, i32, i32) {
    %c0_i32 = arith.constant 0 : i32
    %c0_i32_0 = arith.constant 0 : i32
    %c0_i32_1 = arith.constant 0 : i32
    return %arg0, %c0_i32, %arg1, %c0_i32_0 : i32, i32, i32, i32
  }
  func.func @transform_1(%arg0: i32, %arg1: i32) -> (i32, i32, i32) {
    %c0_i32 = arith.constant 0 : i32
    %c0_i32_0 = arith.constant 0 : i32
    %c0_i32_1 = arith.constant 0 : i32
    %c0_i32_2 = arith.constant 0 : i32
    return %c0_i32, %c0_i32_0, %c0_i32_1 : i32, i32, i32
  }
  func.func @transform_2(%arg0: i32, %arg1: i32) -> (i32, i32) {
    %c0_i32 = arith.constant 0 : i32
    %c0_i32_0 = arith.constant 0 : i32
    %c0_i32_1 = arith.constant 0 : i32
    return %c0_i32, %c0_i32_0 : i32, i32
  }
  func.func @transform_3(%arg0: i32, %arg1: i32) -> (i32, i32) {
    %c0_i32 = arith.constant 0 : i32
    %c0_i32_0 = arith.constant 0 : i32
    return %arg1, %c0_i32 : i32, i32
  }
  func.func @transform_4(%arg0: i32, %arg1: i32) -> (i32, i32, i32) {
    %c0_i32 = arith.constant 0 : i32
    %c0_i32_0 = arith.constant 0 : i32
    return %arg0, %arg1, %c0_i32 : i32, i32, i32
  }
  func.func @transform_5(%arg0: i32, %arg1: i32) -> (i32, i32, i32) {
    %c0_i32 = arith.constant 0 : i32
    %c0_i32_0 = arith.constant 0 : i32
    return %arg0, %arg1, %c0_i32 : i32, i32, i32
  }
  func.func @transform_6(%arg0: i32, %arg1: i32) -> (i32, i32, i32) {
    %c0_i32 = arith.constant 0 : i32
    %c0_i32_0 = arith.constant 0 : i32
    return %arg0, %arg1, %c0_i32 : i32, i32, i32
  }
}

</mosaic_0001>

<bundles_post_ra>
// kernel: pose2d_forward.1
= control target key start
LH: loop header
LB: loop body
LE: loop exit
PB: predicated region body
PF: predicated region fallthrough
CT: control target
= control target key end

     0   :  { %s1496_s21 = smov 0   ;;  %s1498_s22 = smov 0   ;;  %s1734_s0 = inlined_call_operand.vmem [shape: bf16[2,24,16,16], index: 0, kind: input, shape index: {}]   ;;  %s1735_s1 = inlined_call_operand.vmem [shape: bf16[8,16,128], index: 1, kind: input, shape index: {}]   ;;  %s1736_s2 = inlined_call_operand.vmem [shape: f32[1,128], index: 2, kind: input, shape index: {}]   ;;  %s1737_s3 = inlined_call_operand.vmem [shape: f32[16,1], index: 3, kind: input, shape index: {}]   ;;  %s1738_s4 = inlined_call_operand.vmem [shape: f32[2,16,128], index: 4, kind: output, shape index: {0}]   ;;  %s1739_s5 = inlined_call_operand.vmem [shape: f32[2,16,128], index: 5, kind: output, shape index: {1}]   ;;  %s1740_s6 = inlined_call_operand.vmem [shape: f32[2,16,128], index: 6, kind: output, shape index: {2}]  }
   0x1   :  { %s1500_s23 = smov 0   ;;  %s1502_s24 = smov 0  }
   0x2   :  { %s1504_s25 = smov 0   ;;  %s1506_s26 = smov 0  }
   0x3   :  { %s1508_s27 = smov 0  }
   0x4 LB: > { %s26_s28 = sadd.s32 1, %s1450_s25  ;;  %s29_s29 = sadd.s32 1, %s1454_s26  ;;  %s1458_s27 = sphi %s1508_s27, %s17_s27   ;;  %s1454_s26 = sphi %s1506_s26, %s1746_s26   ;;  %s1450_s25 = sphi %s1504_s25, %s1745_s25   ;;  %s1446_s24 = sphi %s1502_s24, %s1744_s24   ;;  %s1442_s23 = sphi %s1500_s23, %s1743_s23   ;;  %s1438_s22 = sphi %s1498_s22, %s1742_s22   ;;  %s1434_s21 = sphi %s1496_s21, %s1741_s21  }
   0x5   : > { %p27_p0 = scmp.ge.s32.totalorder %s26_s28, 2  ;;  %p45_p1 = scmp.ne.s32.totalorder %s1438_s22, %s1434_s21 }
   0x6   : > { %p46_p2 = scmp.eq.s32.totalorder %s1458_s27, 0  ;;  %s38_s9 = sadd.s32 1, %s1438_s22 }
   0x7   : > { %s1748_s28 = smov (%p27_p0, %s26_s28), 0  ;;  %s1750_s29 = smov (!%p27_p0, %s29_s29), %s1454_s26 }
   0x8   : > { %p47_p3 = por %p46_p2, %p45_p1  ;;  %p31_p4 = scmp.ge.s32.totalorder %s1750_s29, 2 }
   0x9   : > { %s34_s30 = ssub.s32 %s1450_s25, %s1748_s28  ;;  %p1224_p6 = scmp.ge.s32.totalorder %s1458_s27, 4 }
   0xa   : > { %s1752_s29 = smov (%p31_p4, %s1750_s29), 0 }
   0xb   : > { %s33_s7 = ssub.s32 %s1454_s26, %s1752_s29  ;;  %229 = sbr.rel (%p1224_p6) target bundleno = 47 (0x2f), region = 24 }
   0xc   : > { %s35_s8 = sor.u32 %s34_s30, %s33_s7 }
   0xd   : > { %p36_p5 = scmp.eq.s32.totalorder %s35_s8, 0 }
   0xf   : > { %s1547_s10 = scalar_select %p36_p5, %s1438_s22, %s38_s9  }
  0x10   : > { %232 = sbr.rel (!%p47_p3) target bundleno = 47 (0x2f), region = 28  ;;  %s234_s11 = sand.u32 (%p47_p3), 1, %s1438_s22  }
  0x11   : > { %s1339_s12 = smul.u32 (%p47_p3), 48, %s1454_s26 }
  0x12   : > { %s1338_s13 = smul.u32 (%p47_p3), 96, %s234_s11 }
  0x13   : > { %s238_s14 = sadd.s32 (%p47_p3), %s1450_s25, %s1339_s12 }
  0x14   : > { %s1225_s15 = sshll.u32 (%p47_p3), %s238_s14, 2  ;;  %s1561_s19 = scalar_lea.vmem (%p47_p3), [#allocation2], %s1338_s13 }
  0x15   : > { %s1556_s18 = scalar_lea.vmem %s1734_s0, %s1225_s15 }
  0x16   : > { %v257_v0 = vld [vmem:[%s1556_s18] sm:$0xf]  ;;  %v259_v1 = vld [vmem:[%s1556_s18 + $0x8] sm:$0xf]  ;;  %v261_v2 = vld [vmem:[%s1556_s18 + $0x10] sm:$0xf] }
  0x17   : > { %258 = vst [vmem:[%s1561_s19] sm:$0xf] %v257_v0  ;;  %v263_v3 = vld [vmem:[%s1556_s18 + $0x18] sm:$0xf]  ;;  %v265_v4 = vld [vmem:[%s1556_s18 + $0x20] sm:$0xf] }
  0x18   : > { %260 = vst [vmem:[%s1561_s19 + $0x4] sm:$0xf] %v259_v1  ;;  %v267_v5 = vld [vmem:[%s1556_s18 + $0x28] sm:$0xf]  ;;  %v269_v6 = vld [vmem:[%s1556_s18 + $0x30] sm:$0xf] }
  0x19   : > { %262 = vst [vmem:[%s1561_s19 + $0x8] sm:$0xf] %v261_v2  ;;  %v271_v7 = vld [vmem:[%s1556_s18 + $0x38] sm:$0xf]  ;;  %v273_v8 = vld [vmem:[%s1556_s18 + $0x40] sm:$0xf] }
  0x1a   : > { %264 = vst [vmem:[%s1561_s19 + $0xc] sm:$0xf] %v263_v3  ;;  %v275_v9 = vld [vmem:[%s1556_s18 + $0x48] sm:$0xf]  ;;  %v277_v10 = vld [vmem:[%s1556_s18 + $0x50] sm:$0xf] }
  0x1b   : > { %266 = vst [vmem:[%s1561_s19 + $0x10] sm:$0xf] %v265_v4  ;;  %v279_v11 = vld [vmem:[%s1556_s18 + $0x58] sm:$0xf]  ;;  %v281_v12 = vld [vmem:[%s1556_s18 + $0x60] sm:$0xf] }
  0x1c   : > { %268 = vst [vmem:[%s1561_s19 + $0x14] sm:$0xf] %v267_v5  ;;  %v283_v13 = vld [vmem:[%s1556_s18 + $0x68] sm:$0xf]  ;;  %v285_v14 = vld [vmem:[%s1556_s18 + $0x70] sm:$0xf] }
  0x1d   : > { %270 = vst [vmem:[%s1561_s19 + $0x18] sm:$0xf] %v269_v6  ;;  %v287_v15 = vld [vmem:[%s1556_s18 + $0x78] sm:$0xf]  ;;  %v289_v16 = vld [vmem:[%s1556_s18 + $0x80] sm:$0xf] }
  0x1e   : > { %272 = vst [vmem:[%s1561_s19 + $0x1c] sm:$0xf] %v271_v7  ;;  %v291_v17 = vld [vmem:[%s1556_s18 + $0x88] sm:$0xf]  ;;  %v293_v18 = vld [vmem:[%s1556_s18 + $0x90] sm:$0xf] }
  0x1f   : > { %274 = vst [vmem:[%s1561_s19 + $0x20] sm:$0xf] %v273_v8  ;;  %v295_v19 = vld [vmem:[%s1556_s18 + $0x98] sm:$0xf]  ;;  %v297_v20 = vld [vmem:[%s1556_s18 + $0xa0] sm:$0xf] }
  0x20   : > { %276 = vst [vmem:[%s1561_s19 + $0x24] sm:$0xf] %v275_v9  ;;  %v299_v21 = vld [vmem:[%s1556_s18 + $0xa8] sm:$0xf]  ;;  %v301_v22 = vld [vmem:[%s1556_s18 + $0xb0] sm:$0xf] }
  0x21   : > { %278 = vst [vmem:[%s1561_s19 + $0x28] sm:$0xf] %v277_v10  ;;  %v303_v23 = vld [vmem:[%s1556_s18 + $0xb8] sm:$0xf] }
  0x22   : > { %280 = vst [vmem:[%s1561_s19 + $0x2c] sm:$0xf] %v279_v11 }
  0x23   : > { %282 = vst [vmem:[%s1561_s19 + $0x30] sm:$0xf] %v281_v12 }
  0x24   : > { %284 = vst [vmem:[%s1561_s19 + $0x34] sm:$0xf] %v283_v13 }
  0x25   : > { %286 = vst [vmem:[%s1561_s19 + $0x38] sm:$0xf] %v285_v14 }
  0x26   : > { %288 = vst [vmem:[%s1561_s19 + $0x3c] sm:$0xf] %v287_v15 }
  0x27   : > { %290 = vst [vmem:[%s1561_s19 + $0x40] sm:$0xf] %v289_v16 }
  0x28   : > { %292 = vst [vmem:[%s1561_s19 + $0x44] sm:$0xf] %v291_v17 }
  0x29   : > { %294 = vst [vmem:[%s1561_s19 + $0x48] sm:$0xf] %v293_v18 }
  0x2a   : > { %296 = vst [vmem:[%s1561_s19 + $0x4c] sm:$0xf] %v295_v19 }
  0x2b   : > { %298 = vst [vmem:[%s1561_s19 + $0x50] sm:$0xf] %v297_v20 }
  0x2c   : > { %300 = vst [vmem:[%s1561_s19 + $0x54] sm:$0xf] %v299_v21 }
  0x2d   : > { %302 = vst [vmem:[%s1561_s19 + $0x58] sm:$0xf] %v301_v22 }
  0x2e   : > { %304 = vst [vmem:[%s1561_s19 + $0x5c] sm:$0xf] %v303_v23 }
  0x2f PF: > { %p1226_p7 = scmp.ge.s32.totalorder %s1458_s27, 1  ;;  %p382_p8 = scmp.lt.s32.totalorder %s1458_s27, 5 }
  0x31   : > { %p383_p9 = pnand %p1226_p7, %p382_p8 }
  0x32   : > { %s389_s9 = sand.u32 (!%p383_p9), 1, %s1434_s21   ;;  %p441_p10 = scmp.lt.s32.totalorder (!%p383_p9), %s1442_s23, 1 }
  0x33   : > { %386 = sbr.rel (%p383_p9) target bundleno = 298 (0x12a), region = 73  ;;  %p445_p11 = scmp.lt.s32.totalorder (!%p383_p9), %s1446_s24, 1 }
  0x34   : > { %s1340_s13 = smul.u32 (!%p383_p9), 96, %s389_s9 }
  0x36   : > { %s1623_s16 = scalar_lea.vmem (!%p383_p9), [#allocation2], %s1340_s13 }
  0x38   : > { %v1331_v24 = vld [vmem:[%s1735_s1 + $0x8] sm:$0xff]  ;;  %v1330_v25 = vld [vmem:[%s1735_s1] sm:$0xff]  ;;  %v1332_v26 = vld [vmem:[%s1735_s1 + $0x10] sm:$0xff]  ;;  %vm488_vm0 = vcmask 130048   ;;  %s1754_s23 = smov (!%p441_p10, %s1442_s23), 1  ;;  %v1460_v49 = vmov 0  }
  0x39   : > { %499 = vmatpush.bf16.msra.mxu0 %v1331_v24  ;;  %521 = vmatpush.bf16.msra.mxu1 %v1330_v25  ;;  %v1333_v27 = vld [vmem:[%s1735_s1 + $0x18] sm:$0xff]  ;;  %v1238_v28 = vld [vmem:[%s1623_s16 + $0x4] sm:$0xf]  ;;  %v472_v29 = vld [vmem:[%s1623_s16] sm:$0xf]  ;;  %s1227_s7 = sshll.u32 %s1754_s23, 3 }
  0x3a   : > { %539 = vmatpush.bf16.msra.mxu2 %v1331_v24  ;;  %555 = vmatpush.bf16.msra.mxu3 %v1330_v25  ;;  %v1249_v30 = vld [vmem:[%s1623_s16 + $0x24] sm:$0xf]  ;;  %v1234_v31 = vld [vmem:[%s1623_s16 + $0x20] sm:$0xf]  ;;  %v1257_v34 = vld [vmem:[%s1623_s16 + $0x8] sm:$0xf]  ;;  %s444_s13 = scalar_lea.vmem %s1737_s3, %s1227_s7 }
  0x3b   : > { %v1252_v32 = vld [vmem:[%s1623_s16 + $0x44] sm:$0xf]  ;;  %v1235_v33 = vld [vmem:[%s1623_s16 + $0x40] sm:$0xf]  ;;  %v1263_v35 = vld [vmem:[%s1623_s16 + $0x28] sm:$0xf]  ;;  %1398 = vset.pattern.permute.xlu0 %v1460_v49 }
  0x3c   : > { %1243 = vmatmul.msk.bf16.vlgmr.msra.gmra.mxu0 %vm488_vm0, %v1238_v28  ;;  %1248 = vmatmul.msk.bf16.vlgmr.msra.gmra.mxu1 %vm488_vm0, %v472_v29  ;;  %v1334_v36 = vld [vmem:[%s1735_s1 + $0x20] sm:$0xff]  ;;  %v1335_v37 = vld [vmem:[%s1735_s1 + $0x28] sm:$0xff]  ;;  %v1336_v42 = vld [vmem:[%s1735_s1 + $0x30] sm:$0xff]  ;;  %s1756_s24 = smov (!%p445_p11, %s1446_s24), 1 }
  0x3d   : > { %589 = vmatpush.bf16.msrb.mxu1 %v1330_v25  ;;  %1250 = vmatmul.msk.bf16.vlgmr.msra.gmra.mxu2 %vm488_vm0, %v1249_v30  ;;  %v1265_v38 = vld [vmem:[%s1623_s16 + $0x48] sm:$0xf]  ;;  %v1269_v39 = vld [vmem:[%s1623_s16 + $0xc] sm:$0xf]  ;;  %v1281_v43 = vld [vmem:[%s1623_s16 + $0x10] sm:$0xf] }
  0x3e   : > { %616 = vmatpush.bf16.msrb.mxu2 %v1332_v26  ;;  %1251 = vmatmul.msk.bf16.vlgmr.msra.gmra.mxu3 %vm488_vm0, %v1234_v31  ;;  %v1275_v40 = vld [vmem:[%s1623_s16 + $0x2c] sm:$0xf]  ;;  %v1287_v44 = vld [vmem:[%s1623_s16 + $0x30] sm:$0xf]  ;;  %v1293_v46 = vld [vmem:[%s1623_s16 + $0x14] sm:$0xf] }
  0x3f   : > { %573 = vmatpush.bf16.msrb.mxu0 %v1331_v24  ;;  %635 = vmatpush.bf16.msrb.mxu3 %v1332_v26  ;;  %v1277_v41 = vld [vmem:[%s1623_s16 + $0x4c] sm:$0xf]  ;;  %v1289_v45 = vld [vmem:[%s1623_s16 + $0x50] sm:$0xf]  ;;  %v1337_v47 = vld [vmem:[%s1735_s1 + $0x38] sm:$0xff]  ;;  %s1228_s14 = sshll.u32 %s1756_s24, 1 }
  0x40   : > { %v992_v48 = vld [vmem:[%s444_s13] sm:$0xff]  ;;  %v1299_v50 = vld [vmem:[%s1623_s16 + $0x34] sm:$0xf]  ;;  %v1305_v52 = vld [vmem:[%s1623_s16 + $0x18] sm:$0xf]  ;;  %s450_s15 = sadd.s32 %s1228_s14, %s1754_s23 }
  0x41   : > { %682 = vmatpush.bf16.msra.mxu1 %v1333_v27  ;;  %1022 = vperm.xlu0 %1398, %v992_v48   ;;  %v1301_v51 = vld [vmem:[%s1623_s16 + $0x54] sm:$0xf]  ;;  %v1311_v53 = vld [vmem:[%s1623_s16 + $0x38] sm:$0xf]  ;;  %v1317_v55 = vld [vmem:[%s1623_s16 + $0x1c] sm:$0xf] }
  0x42   : > { %701 = vmatpush.bf16.msra.mxu2 %v1333_v27  ;;  %v1313_v54 = vld [vmem:[%s1623_s16 + $0x58] sm:$0xf]  ;;  %v1323_v56 = vld [vmem:[%s1623_s16 + $0x3c] sm:$0xf] }
  0x43   : > { %654 = vmatpush.bf16.msra.mxu0 %v1332_v26  ;;  %720 = vmatpush.bf16.msra.mxu3 %v1333_v27  ;;  %v1325_v57 = vld [vmem:[%s1623_s16 + $0x5c] sm:$0xf]  ;;  %s1696_s16 = sshll.u32 %s450_s15, 3 }
  0x44   : > { %s452_s18 = scalar_lea.vmem %s1738_s4, %s1696_s16  ;;  %s460_s30 = scalar_lea.vmem %s1739_s5, %s1696_s16 }
  0x45   : > { %s468_s9 = scalar_lea.vmem %s1740_s6, %s1696_s16 }
  0x4c   : > { %1253 = vmatmul.msk.bf16.vlgmr.msrb.gmra.mxu0 %vm488_vm0, %v1252_v32  ;;  %1254 = vmatmul.msk.bf16.vlgmr.msrb.gmra.mxu1 %vm488_vm0, %v1235_v33 }
  0x4d   : > { %1262 = vmatmul.msk.bf16.vlgmr.msrb.gmra.mxu2 %vm488_vm0, %v1257_v34  ;;  %767 = vmatpush.bf16.msrb.mxu1 %v1334_v36 }
  0x4e   : > { %1264 = vmatmul.msk.bf16.vlgmr.msrb.gmra.mxu3 %vm488_vm0, %v1263_v35  ;;  %786 = vmatpush.bf16.msrb.mxu2 %v1334_v36 }
  0x4f   : > { %748 = vmatpush.bf16.msrb.mxu0 %v1334_v36  ;;  %814 = vmatpush.bf16.msrb.mxu3 %v1335_v37 }
  0x5c   : > { %1266 = vmatmul.msk.bf16.vlgmr.msra.gmra.mxu0 %vm488_vm0, %v1265_v38  ;;  %1274 = vmatmul.msk.bf16.vlgmr.msra.gmra.mxu1 %vm488_vm0, %v1269_v39 }
  0x5d   : > { %1276 = vmatmul.msk.bf16.vlgmr.msra.gmra.mxu2 %vm488_vm0, %v1275_v40  ;;  %852 = vmatpush.bf16.msra.mxu1 %v1335_v37 }
  0x5e   : > { %1278 = vmatmul.msk.bf16.vlgmr.msra.gmra.mxu3 %vm488_vm0, %v1277_v41  ;;  %880 = vmatpush.bf16.msra.mxu2 %v1336_v42 }
  0x5f   : > { %833 = vmatpush.bf16.msra.mxu0 %v1335_v37  ;;  %899 = vmatpush.bf16.msra.mxu3 %v1336_v42 }
  0x6c   : > { %1286 = vmatmul.msk.bf16.vlgmr.msrb.gmra.mxu0 %vm488_vm0, %v1281_v43  ;;  %1288 = vmatmul.msk.bf16.vlgmr.msrb.gmra.mxu1 %vm488_vm0, %v1287_v44 }
  0x6d   : > { %1290 = vmatmul.msk.bf16.vlgmr.msrb.gmra.mxu2 %vm488_vm0, %v1289_v45  ;;  %946 = vmatpush.bf16.msrb.mxu1 %v1337_v47 }
  0x6e   : > { %1298 = vmatmul.msk.bf16.vlgmr.msrb.gmra.mxu3 %vm488_vm0, %v1293_v46  ;;  %918 = vmatpush.bf16.msrb.mxu0 %v1336_v42 }
  0x6f   : > { %965 = vmatpush.bf16.msrb.mxu2 %v1337_v47  ;;  %984 = vmatpush.bf16.msrb.mxu3 %v1337_v47 }
  0x7c   : > { %1300 = vmatmul.msk.bf16.vlgmr.msra.gmra.mxu0 %vm488_vm0, %v1299_v50  ;;  %1302 = vmatmul.msk.bf16.vlgmr.msra.gmra.mxu1 %vm488_vm0, %v1301_v51 }
  0x7d   : > { %1310 = vmatmul.msk.bf16.vlgmr.msra.gmra.mxu2 %vm488_vm0, %v1305_v52 }
  0x7e   : > { %1312 = vmatmul.msk.bf16.vlgmr.msra.gmra.mxu3 %vm488_vm0, %v1311_v53 }
  0x8c   : > { %1314 = vmatmul.msk.bf16.vlgmr.msrb.gmra.mxu0 %vm488_vm0, %v1313_v54  ;;  %1322 = vmatmul.msk.bf16.vlgmr.msrb.gmra.mxu1 %vm488_vm0, %v1317_v55 }
  0x8d   : > { %1324 = vmatmul.msk.bf16.vlgmr.msrb.gmra.mxu2 %vm488_vm0, %v1323_v56 }
  0x8e   : > { %1326 = vmatmul.msk.bf16.vlgmr.msrb.gmra.mxu3 %vm488_vm0, %v1325_v57 }
  0xb9   : > { %v501_v58 = vpop.f32.mrf.mxu0  ;;  %v523_v59 = vpop.f32.mrf.mxu1 }
  0xba   : > { %v524_v60 = vadd.f32 %v523_v59, %v501_v58  ;;  %v1399_v59 = vld [vmem:[%s1736_s2] ss:$0 sm:$0xff] }
  0xc0   : > { %v541_v61 = vpop.f32.mrf.mxu2 }
  0xc1   : > { %v557_v62 = vpop.f32.mrf.mxu3  ;;  %v503_v0 = vpop.f32.mrf.mxu0 }
  0xc2   : > { %v558_v63 = vadd.f32 %v557_v62, %v541_v61  ;;  %v525_v1 = vpop.f32.mrf.mxu1 }
  0xc8   : > { %v543_v2 = vpop.f32.mrf.mxu2 }
  0xc9   : > { %v559_v3 = vpop.f32.mrf.mxu3  ;;  %v575_v4 = vpop.f32.mrf.mxu0 }
  0xca   : > { %v591_v5 = vpop.f32.mrf.mxu1 }
  0xcb   : > { %v592_v37 = vadd.f32 %v591_v5, %v575_v4 }
  0xd0   : > { %v618_v6 = vpop.f32.mrf.mxu2 }
  0xd1   : > { %v637_v7 = vpop.f32.mrf.mxu3  ;;  %v577_v8 = vpop.f32.mrf.mxu0  ;;  %v622_v30 = vadd.f32 %v618_v6, %v524_v60 }
  0xd2   : > { %v593_v9 = vpop.f32.mrf.mxu1  ;;  %v641_v39 = vadd.f32 %v637_v7, %v558_v63  ;;  %v1023_v63 = vpop.permute.xlu0 %1022 }
  0xd8   : > { %v620_v10 = vpop.f32.mrf.mxu2 }
  0xd9   : > { %v639_v11 = vpop.f32.mrf.mxu3  ;;  %v656_v12 = vpop.f32.mrf.mxu0 }
  0xda   : > { %v684_v13 = vpop.f32.mrf.mxu1  ;;  %v660_v40 = vadd.f32 %v656_v12, %v592_v37 }
  0xdb   : > { %v688_v35 = vadd.f32 %v684_v13, %v622_v30 }
  0xe0   : > { %v703_v14 = vpop.f32.mrf.mxu2 }
  0xe1   : > { %v722_v15 = vpop.f32.mrf.mxu3  ;;  %v658_v16 = vpop.f32.mrf.mxu0  ;;  %v707_v44 = vadd.f32 %v703_v14, %v641_v39 }
  0xe2   : > { %v686_v17 = vpop.f32.mrf.mxu1  ;;  %v726_v45 = vadd.f32 %v722_v15, %v660_v40 }
  0xe8   : > { %v705_v18 = vpop.f32.mrf.mxu2 }
  0xe9   : > { %v724_v19 = vpop.f32.mrf.mxu3  ;;  %v750_v20 = vpop.f32.mrf.mxu0 }
  0xea   : > { %v769_v21 = vpop.f32.mrf.mxu1  ;;  %v754_v36 = vadd.f32 %v750_v20, %v688_v35 }
  0xeb   : > { %v773_v49 = vadd.f32 %v769_v21, %v707_v44 }
  0xf0   : > { %v788_v22 = vpop.f32.mrf.mxu2 }
  0xf1   : > { %v816_v23 = vpop.f32.mrf.mxu3  ;;  %v752_v24 = vpop.f32.mrf.mxu0  ;;  %v792_v50 = vadd.f32 %v788_v22, %v726_v45 }
  0xf2   : > { %v771_v25 = vpop.f32.mrf.mxu1  ;;  %v820_v38 = vadd.f32 %v816_v23, %v754_v36 }
  0xf8   : > { %v790_v26 = vpop.f32.mrf.mxu2 }
  0xf9   : > { %v818_v27 = vpop.f32.mrf.mxu3  ;;  %v835_v28 = vpop.f32.mrf.mxu0 }
  0xfa   : > { %v854_v29 = vpop.f32.mrf.mxu1  ;;  %v839_v52 = vadd.f32 %v835_v28, %v773_v49 }
  0xfb   : > { %v858_v53 = vadd.f32 %v854_v29, %v792_v50 }
 0x100   : > { %v882_v31 = vpop.f32.mrf.mxu2 }
 0x101   : > { %v901_v32 = vpop.f32.mrf.mxu3  ;;  %v837_v33 = vpop.f32.mrf.mxu0  ;;  %v886_v41 = vadd.f32 %v882_v31, %v820_v38 }
 0x102   : > { %v856_v34 = vpop.f32.mrf.mxu1  ;;  %v905_v54 = vadd.f32 %v901_v32, %v839_v52 }
 0x108   : > { %v884_v42 = vpop.f32.mrf.mxu2 }
 0x109   : > { %v903_v43 = vpop.f32.mrf.mxu3  ;;  %v920_v46 = vpop.f32.mrf.mxu0 }
 0x10a   : > { %v948_v47 = vpop.f32.mrf.mxu1  ;;  %v924_v55 = vadd.f32 %v920_v46, %v858_v53 }
 0x10b   : > { %v952_v48 = vadd.f32 %v948_v47, %v886_v41 }
 0x10d   : > { %v1327_v51 = vmul.f32 -1.442695, %v952_v48 }
 0x10f   : > { %1400 = vpow2.f32 %v1327_v51 }
 0x110   : > { %v967_v56 = vpop.f32.mrf.mxu2 }
 0x111   : > { %v986_v57 = vpop.f32.mrf.mxu3  ;;  %v971_v58 = vadd.f32 %v967_v56, %v905_v54  ;;  %v922_v62 = vpop.f32.mrf.mxu0 }
 0x112   : > { %v990_v60 = vadd.f32 %v986_v57, %v924_v55  ;;  %v950_v61 = vpop.f32.mrf.mxu1 }
 0x113   : > { %v1013_v0 = vmul.f32 0.1, %v971_v58 }
 0x114   : > { %v1019_v1 = vmul.f32 0.1, %v990_v60 }
 0x115   : > { %v1401_v2 = vpop.eup %1400  ;;  %v1017_v4 = vadd.f32 %v1399_v59, %v1013_v0 }
 0x116   : > { %v996_v3 = vadd.f32 1.0, %v1401_v2  ;;  %v1025_v5 = vadd.f32 %v1023_v63, %v1019_v1 }
 0x117   : > { %1018 = vst [vmem:[%s452_s18] sm:$0xff] %v1017_v4 }
 0x118   : > { %1402 = vrcp.f32 %v996_v3  ;;  %1026 = vst [vmem:[%s460_s30] sm:$0xff] %v1025_v5  ;;  %v969_v6 = vpop.f32.mrf.mxu2  ;;  %v1008_v11 = vand.u32 2147483648, %v996_v3  ;;  %v1006_v13 = vand.u32 2147483647, %v996_v3  ;;  %vm1002_vm2 = vweird.f32 %v996_v3 }
 0x119   : > { %v988_v7 = vpop.f32.mrf.mxu3 }
 0x11a   : > { %v1009_v15 = vor.u32 1.1754944e-38, %v1008_v11  ;;  %vm1007_vm4 = vcmp.eq.f32.partialorder %v1006_v13, 8.507059e+37 }
 0x11e   : > { %v1403_v8 = vpop.eup %1402 }
 0x11f   : > { %v998_v9 = vmul.f32 %v1403_v8, %v996_v3  ;;  %vm1003_vm1 = vweird.f32 %v1403_v8 }
 0x120   : > { %vm1004_vm3 = vmor %vm1002_vm2, %vm1003_vm1 }
 0x121   : > { %v999_v10 = vsub.f32 1.0, %v998_v9 }
 0x123   : > { %v1000_v12 = vmul.f32 %v1403_v8, %v999_v10 }
 0x125   : > { %v1001_v14 = vadd.f32 %v1403_v8, %v1000_v12 }
 0x127   : > { %v1005_v16 = vsel %vm1004_vm3, %v1403_v8, %v1001_v14 }
 0x128   : > { %v1010_v17 = vsel %vm1007_vm4, %v1009_v15, %v1005_v16 }
 0x129   : > { %1012 = vst [vmem:[%s468_s9] sm:$0xff] %v1010_v17 }
 0x12a PF: > { %s17_s27 = sadd.s32 1, %s1458_s27   ;;  %s1741_s21 = smov %s1438_s22 }
 0x12b   : > { %p14_p12 = scmp.ge.s32.totalorder %s17_s27, 6   ;;  %s1742_s22 = smov %s1547_s10 }
 0x12c   : > { %s1743_s23 = smov %s1450_s25  ;;  %s1744_s24 = smov %s1454_s26 }
 0x12d   : > { %s1745_s25 = smov %s1748_s28  ;;  %s1746_s26 = smov %s1752_s29 }
 0x12e   :  { %16 = sbr.rel (!%p14_p12) target bundleno = 4 (0x4), region = 169 }

</bundles_post_ra>
